<compile_context>
chip_gen: v7x
topology: tpu7x:2x2x1
jax: 0.10.0
libtpu: 0.0.40
codegen_flags: <defaults>
</compile_context>

<pallas_src>
import functools

import jax
import jax.numpy as jnp
from jax.experimental import pallas as pl
from jax.experimental.pallas import tpu as pltpu

LANES = 128
TARGET_BLOCK_BYTES = 2 << 20   # ~2 MiB x-tile per grid step (bandwidth-bound regime)
MAX_BM = 4096


def _round_up(a, m):
    return ((a + m - 1) // m) * m


def _ceil_div(a, m):
    return (a + m - 1) // m


def _vmem_capacity_bytes():
    """Physical VMEM per core; conservative (v7x = 64 MiB) if the query fails."""
    try:
        return int(pltpu.get_tpu_info().vmem_capacity_bytes)
    except Exception:
        return 64 << 20


def _pick_tn(Dp, bm, itemsize, budget):
    """Largest output-column tile (multiple of 128 dividing Dp) whose double-buffered
    blocks (x, weight, bias, out) fit `budget`. Falls back to 128."""
    def need(tn):
        return 2 * itemsize * (bm * Dp + Dp * tn + tn + bm * tn)

    best = 128
    for tn in range(Dp, 127, -128):
        if Dp % tn:
            continue
        if need(tn) <= budget:
            best = tn
            break
    return best, need(best)


def linear_kernel(x_ref, wt_ref, b_ref, o_ref):
    # x_ref: (bm, Dp), wt_ref: (Dp, tn) packed (in, out) layout, b_ref: (1, tn)
    acc = jnp.dot(x_ref[...], wt_ref[...], preferred_element_type=jnp.float32)
    o_ref[...] = (acc + b_ref[...]).astype(o_ref.dtype)


def pack_params(weight, bias, lanes=LANES):
    """One-time parameter prep (outside the forward hot path).

    weight: (D, D) PyTorch Linear layout (out_features, in_features)
    bias:   (D,)
    Returns (wt_packed (Dp, Dp), bias_packed (1, Dp), D, r) where r rows of the
    original problem are packed into one lane-dense 128-wide row (block-diagonal
    kron(I_r, W.T) weight), zero-padded up to the next multiple of 128 lanes.
    """
    D = weight.shape[0]
    assert weight.shape == (D, D)
    assert bias.shape == (D,)

    # Pack as many rows as fit in the 128-lane vreg; pad the remainder with zeros.
    # (Relaxed: works for any D < 128, not just divisors of 128.)
    r = max(1, lanes // D) if D < lanes else 1
    Dr = r * D
    Dp = _round_up(Dr, lanes)

    wt = weight.T                                       # (in, out)
    if r > 1:
        wt = jnp.kron(jnp.eye(r, dtype=wt.dtype), wt)   # (Dr, Dr) block-diagonal
    b = jnp.tile(bias, r).reshape(1, Dr)

    if Dp != Dr:
        wt = jnp.pad(wt, ((0, Dp - Dr), (0, Dp - Dr)))
        b = jnp.pad(b, ((0, 0), (0, Dp - Dr)))
    return wt, b, D, r


@functools.partial(jax.jit, static_argnames=("D", "r"))
def kl_autoencoder_forward(x, wt_packed, bias_packed, *, D, r):
    """Forward pass of kl_Autoencoder: x @ W.T + b (decoder is identity)."""
    B, Dx = x.shape
    assert Dx == D
    Dp = wt_packed.shape[0]
    Dr = r * D
    itemsize = jnp.dtype(x.dtype).itemsize

    # ---- row tiling --------------------------------------------------------
    rows = _ceil_div(B, r)  # packed 128-lane rows needed for the real batch
    # ~2 MiB x-tile per grid step, capped at 4096 rows; keep grid >= 2 whenever rows
    # allow it so the "parallel" axis spans both v7x TensorCores.
    preferred_bm = min(
        MAX_BM, max(8, _round_up(_ceil_div(TARGET_BLOCK_BYTES, Dp * itemsize), 8))
    )
    bm = min(preferred_bm, max(8, _round_up(_ceil_div(rows, 2), 8)))
    rows_pad = _round_up(rows, bm)
    grid_i = rows_pad // bm

    # ---- single host-side pad over rows (+ feature pad only if D ∤ 128) ----
    total_rows = rows_pad * r
    if total_rows != B:
        x = jnp.pad(x, ((0, total_rows - B), (0, 0)))
    xp = x.reshape(rows_pad, Dr)
    if Dp != Dr:
        xp = jnp.pad(xp, ((0, 0), (0, Dp - Dr)))

    # ---- VMEM budget & output-column tiling for large D --------------------
    vmem_cap = _vmem_capacity_bytes()
    # Hard ceiling well under physical VMEM: ~48 MiB on v7x (64 MiB phys),
    # ~96 MiB on v5e/v6e (128 MiB phys).
    vmem_ceiling = max(16 << 20, min(int(0.75 * vmem_cap), vmem_cap - (8 << 20)))
    # Let the (double-buffered) blocks use at most half of that; if the resident
    # Dp x Dp weight doesn't fit, column-tile it (tn < Dp, extra grid axis).
    block_budget = vmem_ceiling // 2
    tn, vmem_need = _pick_tn(Dp, bm, itemsize, block_budget)
    grid_j = Dp // tn

    # Always set the scoped-VMEM limit explicitly (v5e defaults to only 16 MiB),
    # never above the per-generation ceiling.
    vmem_limit = int(min(vmem_ceiling, max(vmem_need + (4 << 20), 16 << 20)))

    cost = pl.CostEstimate(
        flops=2 * rows_pad * Dp * Dp,
        transcendentals=0,
        bytes_accessed=(2 * rows_pad * Dp + Dp * Dp + Dp) * itemsize,
    )

    out = pl.pallas_call(
        linear_kernel,
        out_shape=jax.ShapeDtypeStruct((rows_pad, Dp), x.dtype),
        grid_spec=pltpu.PrefetchScalarGridSpec(
            num_scalar_prefetch=0,
            grid=(grid_i, grid_j),
            in_specs=[
                pl.BlockSpec((bm, Dp), lambda i, j: (i, 0)),   # x tile (reused over j)
                pl.BlockSpec((Dp, tn), lambda i, j: (0, j)),   # weight column block
                pl.BlockSpec((1, tn), lambda i, j: (0, j)),    # bias column block
            ],
            out_specs=pl.BlockSpec((bm, tn), lambda i, j: (i, j)),
        ),
        compiler_params=pltpu.CompilerParams(
            dimension_semantics=("parallel", "parallel"),
            vmem_limit_bytes=vmem_limit,
        ),
        cost_estimate=cost,
    )(xp, wt_packed, bias_packed)

    # Crop padding and unpack back to (B, D).
    if Dp != Dr:
        out = out[:, :Dr]
    out = out.reshape(rows_pad * r, D)[:B]
    return out


def init_params(key, input_dim):
    """Deterministic init mimicking nn.Linear(input_dim, input_dim)."""
    k_w, k_b = jax.random.split(key)
    bound = 1.0 / jnp.sqrt(jnp.float32(input_dim))
    weight = jax.random.uniform(
        k_w, (input_dim, input_dim), dtype=jnp.float32, minval=-bound, maxval=bound
    )
    bias = jax.random.uniform(
        k_b, (input_dim,), dtype=jnp.float32, minval=-bound, maxval=bound
    )
    return weight, bias


if __name__ == "__main__":
    key = jax.random.PRNGKey(0)
    k_x, k_p, k_x2, k_x3 = jax.random.split(key, 4)

    B, D = 8, 32                       # features.shape == (N, 32) -> input_dim = 32
    x = jax.random.normal(k_x, (B, D), dtype=jnp.float32)
    weight, bias = init_params(k_p, D)

    # One-time parameter packing (constant params; not on the per-call hot path).
    wt_packed, b_packed, D_, r = pack_params(weight, bias)

    out = kl_autoencoder_forward(x, wt_packed, b_packed, D=D_, r=r)
    out = jax.block_until_ready(out)

    # Reference check (plain JAX) — decoder is identity.
    ref = x @ weight.T + bias
    assert out.shape == (B, D)
    assert jnp.allclose(out, ref, atol=1e-5, rtol=1e-5), float(jnp.abs(out - ref).max())

    # Ragged batch (B not a multiple of the packing factor / tile).
    x2 = jax.random.normal(k_x2, (B + 3, D), dtype=jnp.float32)
    out2 = jax.block_until_ready(
        kl_autoencoder_forward(x2, wt_packed, b_packed, D=D_, r=r)
    )
    ref2 = x2 @ weight.T + bias
    assert out2.shape == (B + 3, D)
    assert jnp.allclose(out2, ref2, atol=1e-5, rtol=1e-5)

    # Larger ragged batch: exercises a multi-step grid (grid_i >= 2) + row padding.
    B3 = 1037
    x3 = jax.random.normal(k_x3, (B3, D), dtype=jnp.float32)
    out3 = jax.block_until_ready(
        kl_autoencoder_forward(x3, wt_packed, b_packed, D=D_, r=r)
    )
    ref3 = x3 @ weight.T + bias
    assert out3.shape == (B3, D)
    assert jnp.allclose(out3, ref3, atol=1e-5, rtol=1e-5)

    print("KERNEL_OK")
</pallas_src>

<mosaic_0001>
module attributes {stable_mosaic.version = 11 : i64} {
  func.func @linear_kernel(%arg0: i32, %arg1: i32, %arg2: memref<8x128xf32, #tpu.memory_space<vmem>>, %arg3: memref<128x128xf32, #tpu.memory_space<vmem>>, %arg4: memref<1x128xf32, #tpu.memory_space<vmem>>, %arg5: memref<8x128xf32, #tpu.memory_space<vmem>>) attributes {dimension_semantics = [#tpu.dimension_semantics<parallel>, #tpu.dimension_semantics<parallel>], iteration_bounds = array<i64: 1, 1>, scalar_prefetch = 0 : i64, scratch_operands = 0 : i64, tpu.core_type = #tpu.core_type<tc>, window_params = [{transform_indices = @transform_0, window_bounds = array<i64: 8, 128>}, {transform_indices = @transform_1, window_bounds = array<i64: 128, 128>}, {transform_indices = @transform_2, window_bounds = array<i64: 1, 128>}, {transform_indices = @transform_3, window_bounds = array<i64: 8, 128>}]} {
    %c0 = arith.constant 0 : index
    %c0_0 = arith.constant 0 : index
    %0 = vector.load %arg2[%c0, %c0_0] : memref<8x128xf32, #tpu.memory_space<vmem>>, vector<8x128xf32>
    %c0_1 = arith.constant 0 : index
    %c0_2 = arith.constant 0 : index
    %1 = vector.load %arg3[%c0_1, %c0_2] : memref<128x128xf32, #tpu.memory_space<vmem>>, vector<128x128xf32>
    %cst = arith.constant dense<0.000000e+00> : vector<8x128xf32>
    %2 = tpu.matmul %0, %1, %cst {dimension_numbers = #tpu.dot_dimension_numbers<[1], [0], [0], [1], [0, 0, 1, 1], [], []>} : vector<8x128xf32>, vector<128x128xf32>, vector<8x128xf32> -> vector<8x128xf32>
    %c0_3 = arith.constant 0 : index
    %c0_4 = arith.constant 0 : index
    %3 = vector.load %arg4[%c0_3, %c0_4] : memref<1x128xf32, #tpu.memory_space<vmem>>, vector<1x128xf32>
    %4 = vector.broadcast %3 : vector<1x128xf32> to vector<8x128xf32>
    %5 = arith.addf %2, %4 : vector<8x128xf32>
    %c0_5 = arith.constant 0 : index
    %c0_6 = arith.constant 0 : index
    %6 = vector.load %arg5[%c0_5, %c0_6] : memref<8x128xf32, #tpu.memory_space<vmem>>, vector<8x128xf32>
    tpu.vector_store %arg5[%c0_5, %c0_6], %5 {strides = array<i32>} : memref<8x128xf32, #tpu.memory_space<vmem>>, vector<8x128xf32>,
    return
  }
  func.func @transform_0(%arg0: i32, %arg1: i32) -> (i32, i32) {
    %c0_i32 = arith.constant 0 : i32
    %c0_i32_0 = arith.constant 0 : i32
    return %arg0, %c0_i32 : i32, i32
  }
  func.func @transform_1(%arg0: i32, %arg1: i32) -> (i32, i32) {
    %c0_i32 = arith.constant 0 : i32
    %c0_i32_0 = arith.constant 0 : i32
    return %c0_i32, %arg1 : i32, i32
  }
  func.func @transform_2(%arg0: i32, %arg1: i32) -> (i32, i32) {
    %c0_i32 = arith.constant 0 : i32
    %c0_i32_0 = arith.constant 0 : i32
    return %c0_i32, %arg1 : i32, i32
  }
  func.func @transform_3(%arg0: i32, %arg1: i32) -> (i32, i32) {
    %c0_i32 = arith.constant 0 : i32
    return %arg0, %arg1 : i32, i32
  }
}

</mosaic_0001>

<bundles_post_ra>
// kernel: kl_autoencoder_forward.1
= control target key start
LH: loop header
LB: loop body
LE: loop exit
PB: predicated region body
PF: predicated region fallthrough
CT: control target
= control target key end

     0   :  { %8 = vsyncpa [#allocation3], 0  ;;  %s235_s12 = smov [#allocation2]   ;;  %s282_s0 = inlined_call_operand.vmem [shape: f32[8,128], index: 0, kind: input, shape index: {}]   ;;  %s283_s1 = inlined_call_operand.hbm [shape: f32[128,128], index: 1, kind: input, shape index: {}]   ;;  %s284_s2 = inlined_call_operand.vmem [shape: f32[1,128], index: 2, kind: input, shape index: {}]   ;;  %s285_s3 = inlined_call_operand.vmem [shape: f32[8,128], index: 3, kind: output, shape index: {}]  }
   0x1   :  { %s16_s13 = sshll.u32 %s235_s12, 4  ;;  %s211_s16 = scalar_lea.hbm %s283_s1, 2048  ;;  %s17_s13 = int_to_ptr.vmem [resolvable:$true] %s16_s13 }
   0x2   :  { %p212_p0 = scmp.ne.s32.totalorder %s283_s1, %s211_s16  ;;  %p215_p1 = scmp.lt.u32.totalorder %s211_s16, %s283_s1 }
   0x4   :  { %p217_p2 = pnand %p215_p1, %p212_p0 }
   0x6   :  { %220 = shalt.err (!%p217_p2)
}
   0x7   :  { %s221_s21 = scalar_lea.vmem %s17_s13, 2048  ;;  %p226_p4 = scmp.lt.s32.totalorder %s17_s13, %s17_s13 }
   0x8   :  { %p222_p3 = scmp.ne.s32.totalorder %s17_s13, %s221_s21  ;;  %p227_p5 = scmp.lt.s32.totalorder %s221_s21, %s221_s21 }
   0xa   :  { %p228_p6 = por %p227_p5, %p226_p4 }
   0xc   :  { %p229_p7 = pnand %p228_p6, %p222_p3 }
   0xe   :  { %232 = shalt.err (!%p229_p7)
}
   0xf   :  { %s236_s22 = smov 128   ;;  %s237_s23 = smov 8  }
  0x10   :  { %22 = dma.hbm_to_vmem [thread:$0]  %s283_s1, 2048, %s17_s13, [#allocation3], %s236_s22, %s236_s22, %s237_s23  }
  0x11   :  { %233 = dma.done.wait [#allocation3], 2048  }
  0x12   :  { %234 = vsyncadd [#allocation3], 4294965248  ;;  %v238_v0 = vmov 0.0|0.0   ;;  %vm239_vm0 = vmmov 0   ;;  %v240_v1 = vmov 0.0   ;;  %v29_v2 = vld [vmem:[#allocation2] sm:$0xff] }
  0x13   :  { %181 = vmatprep.subr.bf16.mxu0 %v238_v0  ;;  %178 = vmatprep.mubr.msk.f32.mxu0 %vm239_vm0, %v240_v1  ;;  %v30_v3 = vld [vmem:[#allocation2 + $0x8] sm:$0xff]  ;;  %v31_v4 = vld [vmem:[#allocation2 + $0x10] sm:$0xff]  ;;  %v32_v6 = vld [vmem:[#allocation2 + $0x18] sm:$0xff] }
  0x14   :  { %v182_v5 = vpack.c.bf16 %v30_v3, %v29_v2  ;;  %v185_v7 = vpack.c.bf16 %v32_v6, %v31_v4  ;;  %v33_v8 = vld [vmem:[#allocation2 + $0x20] sm:$0xff]  ;;  %v34_v9 = vld [vmem:[#allocation2 + $0x28] sm:$0xff]  ;;  %v35_v11 = vld [vmem:[#allocation2 + $0x30] sm:$0xff] }
  0x15   :  { %v188_v10 = vpack.c.bf16 %v34_v9, %v33_v8  ;;  %v36_v12 = vld [vmem:[#allocation2 + $0x38] sm:$0xff]  ;;  %v37_v14 = vld [vmem:[#allocation2 + $0x40] sm:$0xff]  ;;  %v38_v15 = vld [vmem:[#allocation2 + $0x48] sm:$0xff] }
  0x16   :  { %183 = vmatpush3.bf16.msra.mxu0 %v182_v5  ;;  %v191_v13 = vpack.c.bf16 %v36_v12, %v35_v11  ;;  %v194_v16 = vpack.c.bf16 %v38_v15, %v37_v14  ;;  %v39_v17 = vld [vmem:[#allocation2 + $0x50] sm:$0xff]  ;;  %v40_v18 = vld [vmem:[#allocation2 + $0x58] sm:$0xff]  ;;  %v41_v20 = vld [vmem:[#allocation2 + $0x60] sm:$0xff] }
  0x17   :  { %184 = vmatprep.subr.bf16.mxu0 %v238_v0  ;;  %v197_v19 = vpack.c.bf16 %v40_v18, %v39_v17  ;;  %v42_v21 = vld [vmem:[#allocation2 + $0x68] sm:$0xff]  ;;  %v43_v23 = vld [vmem:[#allocation2 + $0x70] sm:$0xff]  ;;  %v44_v24 = vld [vmem:[#allocation2 + $0x78] sm:$0xff] }
  0x18   :  { %v200_v22 = vpack.c.bf16 %v42_v21, %v41_v20  ;;  %v203_v25 = vpack.c.bf16 %v44_v24, %v43_v23  ;;  %v28_v26 = vld [vmem:[%s282_s0] sm:$0xff] }
  0x19   :  { %v128_v27 = vld [vmem:[%s284_s2] ss:$0 sm:$0xff] }
  0x1a   :  { %186 = vmatpush3.bf16.msra.mxu0 %v185_v7 }
  0x1b   :  { %187 = vmatprep.subr.bf16.mxu0 %v238_v0 }
  0x1e   :  { %189 = vmatpush3.bf16.msra.mxu0 %v188_v10 }
  0x1f   :  { %190 = vmatprep.subr.bf16.mxu0 %v238_v0 }
  0x22   :  { %192 = vmatpush3.bf16.msra.mxu0 %v191_v13 }
  0x23   :  { %193 = vmatprep.subr.bf16.mxu0 %v238_v0 }
  0x26   :  { %195 = vmatpush3.bf16.msra.mxu0 %v194_v16 }
  0x27   :  { %196 = vmatprep.subr.bf16.mxu0 %v238_v0 }
  0x2a   :  { %198 = vmatpush3.bf16.msra.mxu0 %v197_v19 }
  0x2b   :  { %199 = vmatprep.subr.bf16.mxu0 %v238_v0 }
  0x2e   :  { %201 = vmatpush3.bf16.msra.mxu0 %v200_v22 }
  0x2f   :  { %202 = vmatprep.subr.bf16.mxu0 %v238_v0 }
  0x32   :  { %204 = vmatpush3.bf16.msra.mxu0 %v203_v25 }
  0x35   :  { %179 = vmatmul.mubr.f32.vlgmr.msra.gmra.mrb[0].mxu0 %v28_v26 }
 0x108   :  { %v118_v28 = vpop.f32.mrb[0].mxu0 }
 0x109   :  { %v119_v29 = vadd.f32 %v128_v27, %v118_v28  ;;  %v180_v30 = vpop.f32.mrb[1].mxu0 }
 0x10b   :  { %122 = vst [vmem:[%s285_s3] sm:$0xff] %v119_v29 }
 0x10c   :  { %127 = vsyncpa [#allocation3], 1 }

</bundles_post_ra>
